<compile_context>
chip_gen: v6e
topology: v6e:2x2x1
jax: 0.10.0
libtpu: 0.0.40
codegen_flags: <defaults>
</compile_context>

<pallas_src>
import jax
import jax.numpy as jnp
from jax.experimental import pallas as pl
from jax.experimental.pallas import tpu as pltpu

OUT_LANES = 128  # lane-dense output block; real output is column 0


def _round_up(x: int, m: int) -> int:
    return (x + m - 1) // m * m


def _qnet_kernel(prb_ref, st_ref, act_ref,
                 w1p_ref, w1s_ref, w1a_ref, b1_ref,
                 w2_ref, b2_ref, w3_ref, b3_ref,
                 out_ref):
    # ---- Layer 1: split-W1 partial matmuls (replaces the HBM concat) ----
    acc = jnp.dot(prb_ref[...], w1p_ref[...], preferred_element_type=jnp.float32)
    acc += jnp.dot(st_ref[...], w1s_ref[...], preferred_element_type=jnp.float32)
    acc += jnp.dot(act_ref[...], w1a_ref[...], preferred_element_type=jnp.float32)
    acc += b1_ref[...]                                   # (1, H1p) broadcast, f32
    h1 = jnp.where(acc > 0, acc, 0.01 * acc)             # LeakyReLU(0.01), f32 on VPU

    # ---- Layer 2 ----
    h2 = jnp.dot(h1.astype(w2_ref.dtype), w2_ref[...],
                 preferred_element_type=jnp.float32)
    h2 += b2_ref[...]                                    # (1, H2p) broadcast, f32
    h2 = jnp.maximum(h2, 0.0)                            # ReLU, f32

    # ---- Layer 3: Linear(->1) as VPU multiply + lane reduce (no 1-wide MXU op) ----
    q = jnp.sum(h2 * w3_ref[...], axis=-1, keepdims=True) + b3_ref[...]   # (TM, 1)
    q = jnp.where(q > 0, q, 0.01 * q)                    # final LeakyReLU(0.01)

    # Lane-dense (unmasked) store; wrapper slices column 0.
    out_ref[...] = jnp.broadcast_to(q, out_ref.shape).astype(out_ref.dtype)


def qnet_forward(prb_embds, state, action, params, *, tm=512):
    """prb_embds: (B, prb_embed_dim); state: (B, 2*tape_size);
    action: (B, tape_size, tape_size) or (B, tape_size**2).
    params: w1 (Din, H1), b1 (H1,), w2 (H1, H2), b2 (H2,), w3 (H2, 1), b3 (1,)
    with weights stored as (in_features, out_features) == PyTorch weight.T."""
    B = state.shape[0]
    action2d = action.reshape(B, -1)

    f_prb = prb_embds.shape[1]
    f_st = state.shape[1]
    f_act = action2d.shape[1]

    w1, b1 = params["w1"], params["b1"]
    w2, b2 = params["w2"], params["b2"]
    w3, b3 = params["w3"], params["b3"]
    h1, h2 = w1.shape[1], w2.shape[1]
    h1p, h2p = _round_up(h1, 128), _round_up(h2, 128)

    # Split W1 row-wise to match the three un-concatenated inputs.
    w1_prb = w1[:f_prb]
    w1_st = w1[f_prb:f_prb + f_st]
    w1_act = w1[f_prb + f_st:]

    def pad2(w, rows, cols):
        return jnp.pad(w, ((0, rows - w.shape[0]), (0, cols - w.shape[1])))

    # Resident weights: bf16 for MXU operands, f32 for VPU-side vectors.
    w1_prb_p = pad2(w1_prb, f_prb, h1p).astype(jnp.bfloat16)
    w1_st_p = pad2(w1_st, f_st, h1p).astype(jnp.bfloat16)
    w1_act_p = pad2(w1_act, f_act, h1p).astype(jnp.bfloat16)
    b1_p = jnp.pad(b1, (0, h1p - h1)).reshape(1, h1p).astype(jnp.float32)
    w2_p = pad2(w2, h1p, h2p).astype(jnp.bfloat16)
    b2_p = jnp.pad(b2, (0, h2p - h2)).reshape(1, h2p).astype(jnp.float32)
    w3_row = jnp.pad(w3.reshape(-1), (0, h2p - h2)).reshape(1, h2p).astype(jnp.float32)
    b3_p = b3.reshape(1, 1).astype(jnp.float32)

    # Batch tiling: large tile, padded batch, single "parallel" grid axis.
    tm = min(tm, _round_up(B, 8))
    b_pad = _round_up(B, tm)

    def padb(x):
        return jnp.pad(x, ((0, b_pad - B), (0, 0)))

    prb_p = padb(prb_embds).astype(jnp.bfloat16)
    st_p = padb(state).astype(jnp.bfloat16)
    act_p = padb(action2d).astype(jnp.bfloat16)

    grid = (b_pad // tm,)

    out = pl.pallas_call(
        _qnet_kernel,
        out_shape=jax.ShapeDtypeStruct((b_pad, OUT_LANES), jnp.float32),
        grid=grid,
        in_specs=[
            # streamed activations (tiled over batch; feature axis = full array)
            pl.BlockSpec((tm, f_prb), lambda i: (i, 0)),
            pl.BlockSpec((tm, f_st), lambda i: (i, 0)),
            pl.BlockSpec((tm, f_act), lambda i: (i, 0)),
            # VMEM-resident weights / biases (constant block index)
            pl.BlockSpec((f_prb, h1p), lambda i: (0, 0)),
            pl.BlockSpec((f_st, h1p), lambda i: (0, 0)),
            pl.BlockSpec((f_act, h1p), lambda i: (0, 0)),
            pl.BlockSpec((1, h1p), lambda i: (0, 0)),
            pl.BlockSpec((h1p, h2p), lambda i: (0, 0)),
            pl.BlockSpec((1, h2p), lambda i: (0, 0)),
            pl.BlockSpec((1, h2p), lambda i: (0, 0)),
            pl.BlockSpec((1, 1), lambda i: (0, 0)),
        ],
        out_specs=pl.BlockSpec((tm, OUT_LANES), lambda i: (i, 0)),
        compiler_params=pltpu.CompilerParams(
            dimension_semantics=("parallel",),
            vmem_limit_bytes=48 * 1024 * 1024,  # safe on v7x (64 MiB physical)
        ),
    )(prb_p, st_p, act_p,
      w1_prb_p, w1_st_p, w1_act_p, b1_p,
      w2_p, b2_p, w3_row, b3_p)

    return out[:B, :1]


def qnet_reference(prb_embds, state, action, params):
    """Pure-JAX f32 reference mirroring the PyTorch forward."""
    B = state.shape[0]
    x = jnp.concatenate([prb_embds, state, action.reshape(B, -1)], axis=1)
    h = x @ params["w1"] + params["b1"]
    h = jnp.where(h > 0, h, 0.01 * h)
    h = h @ params["w2"] + params["b2"]
    h = jnp.maximum(h, 0.0)
    q = h @ params["w3"] + params["b3"]
    return jnp.where(q > 0, q, 0.01 * q)


if __name__ == "__main__":
    key = jax.random.PRNGKey(0)
    B, TAPE, PRB_DIM, H1, H2 = 16, 8, 32, 64, 32
    ks = jax.random.split(key, 9)

    state = jax.random.normal(ks[0], (B, 2 * TAPE), jnp.float32)
    action = jax.random.normal(ks[1], (B, TAPE, TAPE), jnp.float32)
    # probs.embed produced by Qnet.reset() via problem_Encoder; modeled as an input.
    prb_embds = jax.random.normal(ks[2], (B, PRB_DIM), jnp.float32)

    in_dim = PRB_DIM + 2 * TAPE + TAPE * TAPE
    params = dict(
        w1=0.1 * jax.random.normal(ks[3], (in_dim, H1), jnp.float32),
        b1=0.1 * jax.random.normal(ks[4], (H1,), jnp.float32),
        w2=0.1 * jax.random.normal(ks[5], (H1, H2), jnp.float32),
        b2=0.1 * jax.random.normal(ks[6], (H2,), jnp.float32),
        w3=0.1 * jax.random.normal(ks[7], (H2, 1), jnp.float32),
        b3=0.1 * jax.random.normal(ks[8], (1,), jnp.float32),
    )

    q = qnet_forward(prb_embds, state, action, params)
    q = jax.block_until_ready(q)

    q_ref = qnet_reference(prb_embds, state, action, params)
    assert q.shape == (B, 1), q.shape
    assert bool(jnp.isfinite(q).all())
    max_err = float(jnp.max(jnp.abs(q - q_ref)))
    # bf16 MXU operands with f32 accumulation vs. a pure-f32 reference.
    assert max_err < 5e-2, f"max abs error {max_err}"

    print("KERNEL_OK")
</pallas_src>

<mosaic_0001>
module attributes {stable_mosaic.version = 11 : i64} {
  func.func @_qnet_kernel(%arg0: i32, %arg1: memref<16x32xbf16, #tpu.memory_space<vmem>>, %arg2: memref<16x16xbf16, #tpu.memory_space<vmem>>, %arg3: memref<16x64xbf16, #tpu.memory_space<vmem>>, %arg4: memref<32x128xbf16, #tpu.memory_space<vmem>>, %arg5: memref<16x128xbf16, #tpu.memory_space<vmem>>, %arg6: memref<64x128xbf16, #tpu.memory_space<vmem>>, %arg7: memref<1x128xf32, #tpu.memory_space<vmem>>, %arg8: memref<128x128xbf16, #tpu.memory_space<vmem>>, %arg9: memref<1x128xf32, #tpu.memory_space<vmem>>, %arg10: memref<1x128xf32, #tpu.memory_space<vmem>>, %arg11: memref<1x1xf32, #tpu.memory_space<vmem>>, %arg12: memref<16x128xf32, #tpu.memory_space<vmem>>) attributes {dimension_semantics = [#tpu.dimension_semantics<parallel>], iteration_bounds = array<i64: 1>, scalar_prefetch = 0 : i64, scratch_operands = 0 : i64, tpu.core_type = #tpu.core_type<tc>, window_params = [{transform_indices = @transform_0, window_bounds = array<i64: 16, 32>}, {transform_indices = @transform_1, window_bounds = array<i64: 16, 16>}, {transform_indices = @transform_2, window_bounds = array<i64: 16, 64>}, {pipeline_mode = #tpu.pipeline_mode<synchronous>, transform_indices = @transform_3, window_bounds = array<i64: 32, 128>}, {pipeline_mode = #tpu.pipeline_mode<synchronous>, transform_indices = @transform_4, window_bounds = array<i64: 16, 128>}, {pipeline_mode = #tpu.pipeline_mode<synchronous>, transform_indices = @transform_5, window_bounds = array<i64: 64, 128>}, {pipeline_mode = #tpu.pipeline_mode<synchronous>, transform_indices = @transform_6, window_bounds = array<i64: 1, 128>}, {pipeline_mode = #tpu.pipeline_mode<synchronous>, transform_indices = @transform_7, window_bounds = array<i64: 128, 128>}, {pipeline_mode = #tpu.pipeline_mode<synchronous>, transform_indices = @transform_8, window_bounds = array<i64: 1, 128>}, {pipeline_mode = #tpu.pipeline_mode<synchronous>, transform_indices = @transform_9, window_bounds = array<i64: 1, 128>}, {pipeline_mode = #tpu.pipeline_mode<synchronous>, transform_indices = @transform_10, window_bounds = array<i64: 1, 1>}, {transform_indices = @transform_11, window_bounds = array<i64: 16, 128>}]} {
    %c0 = arith.constant 0 : index
    %c0_0 = arith.constant 0 : index
    %0 = vector.load %arg1[%c0, %c0_0] : memref<16x32xbf16, #tpu.memory_space<vmem>>, vector<16x32xbf16>
    %c0_1 = arith.constant 0 : index
    %c0_2 = arith.constant 0 : index
    %1 = vector.load %arg4[%c0_1, %c0_2] : memref<32x128xbf16, #tpu.memory_space<vmem>>, vector<32x128xbf16>
    %cst = arith.constant dense<0.000000e+00> : vector<16x128xf32>
    %2 = tpu.matmul %0, %1, %cst {dimension_numbers = #tpu.dot_dimension_numbers<[1], [0], [0], [1], [0, 0, 1, 1], [], []>} : vector<16x32xbf16>, vector<32x128xbf16>, vector<16x128xf32> -> vector<16x128xf32>
    %c0_3 = arith.constant 0 : index
    %c0_4 = arith.constant 0 : index
    %3 = vector.load %arg2[%c0_3, %c0_4] : memref<16x16xbf16, #tpu.memory_space<vmem>>, vector<16x16xbf16>
    %c0_5 = arith.constant 0 : index
    %c0_6 = arith.constant 0 : index
    %4 = vector.load %arg5[%c0_5, %c0_6] : memref<16x128xbf16, #tpu.memory_space<vmem>>, vector<16x128xbf16>
    %cst_7 = arith.constant dense<0.000000e+00> : vector<16x128xf32>
    %5 = tpu.matmul %3, %4, %cst_7 {dimension_numbers = #tpu.dot_dimension_numbers<[1], [0], [0], [1], [0, 0, 1, 1], [], []>} : vector<16x16xbf16>, vector<16x128xbf16>, vector<16x128xf32> -> vector<16x128xf32>
    %6 = arith.addf %2, %5 : vector<16x128xf32>
    %c0_8 = arith.constant 0 : index
    %c0_9 = arith.constant 0 : index
    %7 = vector.load %arg3[%c0_8, %c0_9] : memref<16x64xbf16, #tpu.memory_space<vmem>>, vector<16x64xbf16>
    %c0_10 = arith.constant 0 : index
    %c0_11 = arith.constant 0 : index
    %8 = vector.load %arg6[%c0_10, %c0_11] : memref<64x128xbf16, #tpu.memory_space<vmem>>, vector<64x128xbf16>
    %cst_12 = arith.constant dense<0.000000e+00> : vector<16x128xf32>
    %9 = tpu.matmul %7, %8, %cst_12 {dimension_numbers = #tpu.dot_dimension_numbers<[1], [0], [0], [1], [0, 0, 1, 1], [], []>} : vector<16x64xbf16>, vector<64x128xbf16>, vector<16x128xf32> -> vector<16x128xf32>
    %10 = arith.addf %6, %9 : vector<16x128xf32>
    %c0_13 = arith.constant 0 : index
    %c0_14 = arith.constant 0 : index
    %11 = vector.load %arg7[%c0_13, %c0_14] : memref<1x128xf32, #tpu.memory_space<vmem>>, vector<1x128xf32>
    %12 = vector.broadcast %11 : vector<1x128xf32> to vector<16x128xf32>
    %13 = arith.addf %10, %12 : vector<16x128xf32>
    %cst_15 = arith.constant 0.000000e+00 : f32
    %14 = vector.broadcast %cst_15 : f32 to vector<16x128xf32>
    %15 = arith.cmpf ogt, %13, %14 : vector<16x128xf32>
    %cst_16 = arith.constant 0.00999999977 : f32
    %16 = vector.broadcast %cst_16 : f32 to vector<16x128xf32>
    %17 = arith.mulf %16, %13 : vector<16x128xf32>
    %18 = arith.select %15, %13, %17 : vector<16x128xi1>, vector<16x128xf32>
    %19 = arith.truncf %18 : vector<16x128xf32> to vector<16x128xbf16>
    %c0_17 = arith.constant 0 : index
    %c0_18 = arith.constant 0 : index
    %20 = vector.load %arg8[%c0_17, %c0_18] : memref<128x128xbf16, #tpu.memory_space<vmem>>, vector<128x128xbf16>
    %cst_19 = arith.constant dense<0.000000e+00> : vector<16x128xf32>
    %21 = tpu.matmul %19, %20, %cst_19 {dimension_numbers = #tpu.dot_dimension_numbers<[1], [0], [0], [1], [0, 0, 1, 1], [], []>} : vector<16x128xbf16>, vector<128x128xbf16>, vector<16x128xf32> -> vector<16x128xf32>
    %c0_20 = arith.constant 0 : index
    %c0_21 = arith.constant 0 : index
    %22 = vector.load %arg9[%c0_20, %c0_21] : memref<1x128xf32, #tpu.memory_space<vmem>>, vector<1x128xf32>
    %23 = vector.broadcast %22 : vector<1x128xf32> to vector<16x128xf32>
    %24 = arith.addf %21, %23 : vector<16x128xf32>
    %cst_22 = arith.constant 0.000000e+00 : f32
    %25 = vector.broadcast %cst_22 : f32 to vector<16x128xf32>
    %26 = arith.maximumf %24, %25 : vector<16x128xf32>
    %c0_23 = arith.constant 0 : index
    %c0_24 = arith.constant 0 : index
    %27 = vector.load %arg10[%c0_23, %c0_24] : memref<1x128xf32, #tpu.memory_space<vmem>>, vector<1x128xf32>
    %28 = vector.broadcast %27 : vector<1x128xf32> to vector<16x128xf32>
    %29 = arith.mulf %26, %28 : vector<16x128xf32>
    %cst_25 = arith.constant dense<0.000000e+00> : vector<16xf32>
    %30 = vector.multi_reduction <add>, %29, %cst_25 [1] : vector<16x128xf32> to vector<16xf32>
    %31 = vector.shape_cast %30 : vector<16xf32> to vector<16x1xf32>
    %c0_26 = arith.constant 0 : index
    %c0_27 = arith.constant 0 : index
    %32 = vector.load %arg11[%c0_26, %c0_27] : memref<1x1xf32, #tpu.memory_space<vmem>>, vector<1x1xf32>
    %33 = vector.broadcast %32 : vector<1x1xf32> to vector<16x1xf32>
    %34 = arith.addf %31, %33 : vector<16x1xf32>
    %cst_28 = arith.constant 0.000000e+00 : f32
    %35 = vector.broadcast %cst_28 : f32 to vector<16x1xf32>
    %36 = arith.cmpf ogt, %34, %35 : vector<16x1xf32>
    %cst_29 = arith.constant 0.00999999977 : f32
    %37 = vector.broadcast %cst_29 : f32 to vector<16x1xf32>
    %38 = arith.mulf %37, %34 : vector<16x1xf32>
    %39 = arith.select %36, %34, %38 : vector<16x1xi1>, vector<16x1xf32>
    %40 = vector.shape_cast %39 : vector<16x1xf32> to vector<16x1xf32>
    %41 = vector.broadcast %40 : vector<16x1xf32> to vector<16x128xf32>
    %c0_30 = arith.constant 0 : index
    %c0_31 = arith.constant 0 : index
    %42 = vector.load %arg12[%c0_30, %c0_31] : memref<16x128xf32, #tpu.memory_space<vmem>>, vector<16x128xf32>
    tpu.vector_store %arg12[%c0_30, %c0_31], %41 {strides = array<i32>} : memref<16x128xf32, #tpu.memory_space<vmem>>, vector<16x128xf32>,
    return
  }
  func.func @transform_0(%arg0: i32) -> (i32, i32) {
    %c0_i32 = arith.constant 0 : i32
    %c0_i32_0 = arith.constant 0 : i32
    return %arg0, %c0_i32 : i32, i32
  }
  func.func @transform_1(%arg0: i32) -> (i32, i32) {
    %c0_i32 = arith.constant 0 : i32
    %c0_i32_0 = arith.constant 0 : i32
    return %arg0, %c0_i32 : i32, i32
  }
  func.func @transform_2(%arg0: i32) -> (i32, i32) {
    %c0_i32 = arith.constant 0 : i32
    %c0_i32_0 = arith.constant 0 : i32
    return %arg0, %c0_i32 : i32, i32
  }
  func.func @transform_3(%arg0: i32) -> (i32, i32) {
    %c0_i32 = arith.constant 0 : i32
    %c0_i32_0 = arith.constant 0 : i32
    %c0_i32_1 = arith.constant 0 : i32
    return %c0_i32, %c0_i32_0 : i32, i32
  }
  func.func @transform_4(%arg0: i32) -> (i32, i32) {
    %c0_i32 = arith.constant 0 : i32
    %c0_i32_0 = arith.constant 0 : i32
    %c0_i32_1 = arith.constant 0 : i32
    return %c0_i32, %c0_i32_0 : i32, i32
  }
  func.func @transform_5(%arg0: i32) -> (i32, i32) {
    %c0_i32 = arith.constant 0 : i32
    %c0_i32_0 = arith.constant 0 : i32
    %c0_i32_1 = arith.constant 0 : i32
    return %c0_i32, %c0_i32_0 : i32, i32
  }
  func.func @transform_6(%arg0: i32) -> (i32, i32) {
    %c0_i32 = arith.constant 0 : i32
    %c0_i32_0 = arith.constant 0 : i32
    %c0_i32_1 = arith.constant 0 : i32
    return %c0_i32, %c0_i32_0 : i32, i32
  }
  func.func @transform_7(%arg0: i32) -> (i32, i32) {
    %c0_i32 = arith.constant 0 : i32
    %c0_i32_0 = arith.constant 0 : i32
    %c0_i32_1 = arith.constant 0 : i32
    return %c0_i32, %c0_i32_0 : i32, i32
  }
  func.func @transform_8(%arg0: i32) -> (i32, i32) {
    %c0_i32 = arith.constant 0 : i32
    %c0_i32_0 = arith.constant 0 : i32
    %c0_i32_1 = arith.constant 0 : i32
    return %c0_i32, %c0_i32_0 : i32, i32
  }
  func.func @transform_9(%arg0: i32) -> (i32, i32) {
    %c0_i32 = arith.constant 0 : i32
    %c0_i32_0 = arith.constant 0 : i32
    %c0_i32_1 = arith.constant 0 : i32
    return %c0_i32, %c0_i32_0 : i32, i32
  }
  func.func @transform_10(%arg0: i32) -> (i32, i32) {
    %c0_i32 = arith.constant 0 : i32
    %c0_i32_0 = arith.constant 0 : i32
    %c0_i32_1 = arith.constant 0 : i32
    return %c0_i32, %c0_i32_0 : i32, i32
  }
  func.func @transform_11(%arg0: i32) -> (i32, i32) {
    %c0_i32 = arith.constant 0 : i32
    %c0_i32_0 = arith.constant 0 : i32
    return %arg0, %c0_i32 : i32, i32
  }
}

</mosaic_0001>

<bundles_post_ra>
// kernel: tpu_custom_call.1
= control target key start
LH: loop header
LB: loop body
LE: loop exit
PB: predicated region body
PF: predicated region fallthrough
CT: control target
= control target key end

     0   :  { %s934_s0 = inlined_call_operand.hbm [shape: bf16[16,32], index: 0, kind: input, shape index: {}]   ;;  %s935_s1 = inlined_call_operand.hbm [shape: bf16[16,16], index: 1, kind: input, shape index: {}]   ;;  %s936_s2 = inlined_call_operand.hbm [shape: bf16[16,64], index: 2, kind: input, shape index: {}]   ;;  %s937_s3 = inlined_call_operand.hbm [shape: bf16[32,128], index: 3, kind: input, shape index: {}]   ;;  %s938_s4 = inlined_call_operand.vmem [shape: bf16[16,128], index: 4, kind: input, shape index: {}]   ;;  %s939_s5 = inlined_call_operand.hbm [shape: bf16[64,128], index: 5, kind: input, shape index: {}]   ;;  %s940_s6 = inlined_call_operand.vmem [shape: f32[1,128], index: 6, kind: input, shape index: {}]   ;;  %s941_s7 = inlined_call_operand.hbm [shape: bf16[128,128], index: 7, kind: input, shape index: {}]   ;;  %s942_s8 = inlined_call_operand.vmem [shape: f32[1,128], index: 8, kind: input, shape index: {}]   ;;  %s943_s9 = inlined_call_operand.vmem [shape: f32[1,128], index: 9, kind: input, shape index: {}]   ;;  %s944_s10 = inlined_call_operand.<no memory space> [shape: f32[1,1], index: 10, kind: input, shape index: {}]   ;;  %s945_s11 = inlined_call_operand.hbm [shape: f32[16,128], index: 11, kind: output, shape index: {}]  }
   0x1   :  { %v16_v0 = vstv %s944_s10 }
   0x2   :  { %17 = vst [vmem:[#allocation2] sm:$0x1] %v16_v0 }
   0x3   :  { %18 = vsyncpa [#allocation4], 0 }
   0x4   :  { %19 = vsyncpa [#allocation7], 0 }
   0x5   :  { %20 = vsyncpa [#allocation10], 0 }
   0x6   :  { %21 = vsyncpa [#allocation13], 0 }
   0x7   :  { %22 = vsyncpa [#allocation5], 0  ;;  %s802_s19 = smov [#allocation6]   ;;  %s803_s21 = smov [#allocation9]  }
   0x8   :  { %s40_s20 = sshll.u32 %s802_s19, 4  ;;  %s64_s22 = sshll.u32 %s803_s21, 4  ;;  %s41_s20 = int_to_ptr.vmem [resolvable:$true] %s40_s20  ;;  %s65_s22 = int_to_ptr.vmem [resolvable:$true] %s64_s22 }
   0x9   :  { %s660_s23 = scalar_lea.vmem %s41_s20, 128  ;;  %p665_p1 = scmp.lt.s32.totalorder %s41_s20, %s41_s20 }
   0xa   :  { %p661_p0 = scmp.ne.s32.totalorder %s41_s20, %s660_s23  ;;  %p666_p2 = scmp.lt.s32.totalorder %s660_s23, %s660_s23 }
   0xc   :  { %p667_p3 = por %p666_p2, %p665_p1 }
   0xe   :  { %p668_p4 = pnand %p667_p3, %p661_p0 }
  0x10   :  { %671 = shalt.err (!%p668_p4)
}
  0x11   :  { %s804_s10 = smov 64   ;;  %s805_s24 = smov 4  }
  0x12   :  { %46 = dma.hbm_to_vmem [thread:$0]  %s935_s1, 128, %s41_s20, [#allocation7], %s804_s10, %s804_s10, %s805_s24  }
  0x13   :  { %s680_s27 = scalar_lea.vmem %s65_s22, 256  ;;  %p685_p6 = scmp.lt.s32.totalorder %s65_s22, %s65_s22 }
  0x14   :  { %p681_p5 = scmp.ne.s32.totalorder %s65_s22, %s680_s27  ;;  %p686_p7 = scmp.lt.s32.totalorder %s680_s27, %s680_s27 }
  0x16   :  { %p687_p8 = por %p686_p7, %p685_p6 }
  0x18   :  { %p688_p9 = pnand %p687_p8, %p681_p5 }
  0x1a   :  { %691 = shalt.err (!%p688_p9)
}
  0x1b   :  { %70 = dma.hbm_to_vmem [thread:$0]  %s937_s3, 256, %s65_s22, [#allocation10], %s804_s10, %s804_s10, %s805_s24  }
  0x1c   :  { %s806_s30 = smov [#allocation3]   ;;  %s807_s13 = smov [#allocation8]  }
  0x1d   :  { %s28_s12 = sshll.u32 %s806_s30, 4  ;;  %s52_s14 = sshll.u32 %s807_s13, 4  ;;  %s29_s12 = int_to_ptr.vmem [resolvable:$true] %s28_s12  ;;  %s53_s14 = int_to_ptr.vmem [resolvable:$true] %s52_s14 }
  0x1e   :  { %s700_s1 = scalar_lea.vmem %s29_s12, 128  ;;  %p705_p11 = scmp.lt.s32.totalorder %s29_s12, %s29_s12 }
  0x1f   :  { %p701_p10 = scmp.ne.s32.totalorder %s29_s12, %s700_s1  ;;  %p706_p12 = scmp.lt.s32.totalorder %s700_s1, %s700_s1 }
  0x21   :  { %p707_p13 = por %p706_p12, %p705_p11 }
  0x23   :  { %p708_p0 = pnand %p707_p13, %p701_p10 }
  0x25   :  { %711 = shalt.err (!%p708_p0)
}
  0x26   :  { %34 = dma.hbm_to_vmem [thread:$0]  %s934_s0, 128, %s29_s12, [#allocation4], %s804_s10, %s804_s10, %s805_s24  }
  0x27   :  { %s720_s3 = scalar_lea.vmem %s53_s14, 128  ;;  %p725_p2 = scmp.lt.s32.totalorder %s53_s14, %s53_s14 }
  0x28   :  { %p721_p1 = scmp.ne.s32.totalorder %s53_s14, %s720_s3  ;;  %p726_p3 = scmp.lt.s32.totalorder %s720_s3, %s720_s3 }
  0x2a   :  { %p727_p4 = por %p726_p3, %p725_p2 }
  0x2c   :  { %p728_p5 = pnand %p727_p4, %p721_p1 }
  0x2e   :  { %731 = shalt.err (!%p728_p5)
}
  0x2f   :  { %58 = dma.hbm_to_vmem [thread:$0]  %s936_s2, 128, %s53_s14, [#allocation7], %s804_s10, %s804_s10, %s805_s24  }
  0x30   :  { %s808_s19 = smov [#allocation11]   ;;  %s809_s21 = smov [#allocation12]  }
  0x31   :  { %s78_s20 = sshll.u32 %s808_s19, 4  ;;  %s92_s22 = sshll.u32 %s809_s21, 4  ;;  %s79_s20 = int_to_ptr.vmem [resolvable:$true] %s78_s20  ;;  %s93_s22 = int_to_ptr.vmem [resolvable:$true] %s92_s22 }
  0x32   :  { %s740_s0 = scalar_lea.vmem %s79_s20, 512  ;;  %p745_p7 = scmp.lt.s32.totalorder %s79_s20, %s79_s20 }
  0x33   :  { %p741_p6 = scmp.ne.s32.totalorder %s79_s20, %s740_s0  ;;  %p746_p8 = scmp.lt.s32.totalorder %s740_s0, %s740_s0 }
  0x35   :  { %p747_p9 = por %p746_p8, %p745_p7 }
  0x37   :  { %p748_p10 = pnand %p747_p9, %p741_p6 }
  0x39   :  { %751 = shalt.err (!%p748_p10)
}
  0x3a   :  { %84 = dma.hbm_to_vmem [thread:$0]  %s939_s5, 512, %s79_s20, [#allocation10], %s804_s10, %s804_s10, %s805_s24  }
  0x3b   :  { %s760_s2 = scalar_lea.vmem %s93_s22, 1024  ;;  %p765_p12 = scmp.lt.s32.totalorder %s93_s22, %s93_s22 }
  0x3c   :  { %p761_p11 = scmp.ne.s32.totalorder %s93_s22, %s760_s2  ;;  %p766_p13 = scmp.lt.s32.totalorder %s760_s2, %s760_s2 }
  0x3e   :  { %p767_p0 = por %p766_p13, %p765_p12 }
  0x40   :  { %p768_p1 = pnand %p767_p0, %p761_p11 }
  0x42   :  { %771 = shalt.err (!%p768_p1)
}
  0x43   :  { %98 = dma.hbm_to_vmem [thread:$0]  %s941_s7, 1024, %s93_s22, [#allocation13], %s804_s10, %s804_s10, %s805_s24  }
  0x44   :  { %792 = dma.done.wait [#allocation4], 128  }
  0x45   :  { %793 = vsyncadd [#allocation4], 4294967168 }
  0x46   :  { %794 = dma.done.wait [#allocation7], 256  }
  0x47   :  { %795 = vsyncadd [#allocation7], 4294967040 }
  0x48   :  { %796 = dma.done.wait [#allocation10], 768  }
  0x49   :  { %797 = vsyncadd [#allocation10], 4294966528 }
  0x4a   :  { %798 = dma.done.wait [#allocation13], 1024  }
  0x4b   :  { %799 = vsyncadd [#allocation13], 4294966272  ;;  %v810_v1 = vmov 0.0   ;;  %vm811_vm0 = vmmov 0   ;;  %v634_v2 = vld [vmem:[%s938_s4] sm:$0xff]   ;;  %v635_v3 = vld [vmem:[#allocation6] sm:$0xff]  }
  0x4c   :  { %572 = vmatprep.subr.bf16.mxu0 %v810_v1  ;;  %574 = vmatprep.mubr.msk.bf16.mxu0 %vm811_vm0, %v810_v1  ;;  %vm145_vm1 = vcmask 130048   ;;  %v636_v4 = vld [vmem:[#allocation9 + $0x8] sm:$0xff]   ;;  %v637_v5 = vld [vmem:[#allocation9] sm:$0xff]   ;;  %vm207_vm2 = vcmask 261120   ;;  %v641_v9 = vld [vmem:[#allocation11 + $0x8] sm:$0xff]   ;;  %vm291_vm3 = vcmask 523264  }
  0x4d   :  { %598 = vmatprep.subr.bf16.mxu1 %v810_v1  ;;  %614 = vmatprep.mubr.msk.bf16.mxu1 %vm811_vm0, %v810_v1  ;;  %v638_v6 = vld [vmem:[#allocation3] sm:$0xff]   ;;  %v640_v8 = vld [vmem:[#allocation11 + $0x10] sm:$0xff]   ;;  %v642_v10 = vld [vmem:[#allocation11] sm:$0xff]   ;;  %v812_v56 = vmov 0  }
  0x4e   :  { %573 = vmatpush3.bf16.msra.mxu0 %v634_v2  ;;  %v639_v7 = vld [vmem:[#allocation11 + $0x18] sm:$0xff]   ;;  %v643_v11 = vld [vmem:[#allocation8] sm:$0xff]   ;;  %v645_v13 = vld [vmem:[#allocation12 + $0x30] sm:$0xff]   ;;  %632 = vset.pattern.permute.xlu1 %v812_v56 }
  0x4f   :  { %578 = vmatprep.subr.bf16.mxu0 %v810_v1  ;;  %v644_v12 = vld [vmem:[#allocation12 + $0x38] sm:$0xff]   ;;  %v646_v14 = vld [vmem:[#allocation12 + $0x28] sm:$0xff]   ;;  %v647_v15 = vld [vmem:[#allocation12 + $0x20] sm:$0xff]   ;;  %633 = vset.pattern.permute.xlu0 %v812_v56 }
  0x50   :  { %599 = vmatpush3.bf16.msra.mxu1 %v644_v12  ;;  %v648_v16 = vld [vmem:[#allocation12 + $0x18] sm:$0xff]   ;;  %v649_v17 = vld [vmem:[#allocation12 + $0x10] sm:$0xff]   ;;  %v650_v18 = vld [vmem:[#allocation12 + $0x8] sm:$0xff]  }
  0x51   :  { %575 = vmatmul.mubr.msk.bf16.vlgmr.msra.gmra.mxu0 %vm145_vm1, %v635_v3  ;;  %600 = vmatprep.subr.bf16.mxu1 %v810_v1  ;;  %v651_v19 = vld [vmem:[#allocation12] sm:$0xff]   ;;  %v541_v30 = vld [vmem:[%s940_s6] ss:$0 sm:$0xff] }
  0x52   :  { %579 = vmatpush3.bf16.msra.mxu0 %v636_v4  ;;  %582 = vmatprep.mubr.msk.bf16.mxu0 %vm811_vm0, %v810_v1  ;;  %v542_v44 = vld [vmem:[%s942_s8] ss:$0 sm:$0xff]  ;;  %s813_s8 = smov [#allocation14]  }
  0x53   :  { %580 = vmatprep.subr.bf16.mxu0 %v810_v1  ;;  %v551_v48 = vld [vmem:[%s943_s9] ss:$0 sm:$0xff]  ;;  %s513_s9 = sshll.u32 %s813_s8, 4  ;;  %s514_s9 = int_to_ptr.vmem [resolvable:$true] %s513_s9 }
  0x54   :  { %601 = vmatpush3.bf16.msra.mxu1 %v645_v13  ;;  %v552_v57 = vld [vmem:[#allocation2] ss:$0 sm:$0xff]  ;;  %s772_s30 = scalar_lea.vmem %s514_s9, 256  ;;  %p777_p3 = scmp.lt.s32.totalorder %s514_s9, %s514_s9 }
  0x55   :  { %602 = vmatprep.subr.bf16.mxu1 %v810_v1  ;;  %p773_p2 = scmp.ne.s32.totalorder %s514_s9, %s772_s30  ;;  %p778_p4 = scmp.lt.s32.totalorder %s772_s30, %s772_s30 }
  0x56   :  { %581 = vmatpush3.bf16.msra.mxu0 %v637_v5 }
  0x57   :  { %586 = vmatprep.subr.bf16.mxu0 %v810_v1  ;;  %p779_p5 = por %p778_p4, %p777_p3 }
  0x58   :  { %603 = vmatpush3.bf16.msra.mxu1 %v646_v14 }
  0x59   :  { %583 = vmatmul.mubr.msk.bf16.vlgmr.msra.gmra.mxu0 %vm207_vm2, %v638_v6  ;;  %604 = vmatprep.subr.bf16.mxu1 %v810_v1  ;;  %p780_p6 = pnand %p779_p5, %p773_p2 }
  0x5a   :  { %587 = vmatpush3.bf16.msra.mxu0 %v639_v7  ;;  %594 = vmatprep.mubr.msk.bf16.mxu0 %vm811_vm0, %v810_v1 }
  0x5b   :  { %588 = vmatprep.subr.bf16.mxu0 %v810_v1 }
  0x5c   :  { %605 = vmatpush3.bf16.msra.mxu1 %v647_v15 }
  0x5d   :  { %606 = vmatprep.subr.bf16.mxu1 %v810_v1 }
  0x5e   :  { %589 = vmatpush3.bf16.msra.mxu0 %v640_v8 }
  0x5f   :  { %590 = vmatprep.subr.bf16.mxu0 %v810_v1 }
  0x60   :  { %607 = vmatpush3.bf16.msra.mxu1 %v648_v16 }
  0x61   :  { %608 = vmatprep.subr.bf16.mxu1 %v810_v1 }
  0x62   :  { %591 = vmatpush3.bf16.msra.mxu0 %v641_v9 }
  0x63   :  { %592 = vmatprep.subr.bf16.mxu0 %v810_v1 }
  0x64   :  { %609 = vmatpush3.bf16.msra.mxu1 %v649_v17 }
  0x65   :  { %610 = vmatprep.subr.bf16.mxu1 %v810_v1 }
  0x66   :  { %593 = vmatpush3.bf16.msra.mxu0 %v642_v10 }
  0x68   :  { %611 = vmatpush3.bf16.msra.mxu1 %v650_v18 }
  0x69   :  { %595 = vmatmul.mubr.msk.bf16.vlgmr.msra.gmra.mxu0 %vm291_vm3, %v643_v11  ;;  %612 = vmatprep.subr.bf16.mxu1 %v810_v1 }
  0x6c   :  { %613 = vmatpush3.bf16.msra.mxu1 %v651_v19 }
 0x111   :  { %v183_v20 = vpop.f32.mrf.mxu0 }
 0x113   :  { %v576_v21 = vpop.f32.mrf.mxu0 }
 0x115   :  { %v186_v22 = vpop.f32.mrf.mxu0 }
 0x117   :  { %v577_v23 = vpop.f32.mrf.mxu0 }
 0x119   :  { %v245_v24 = vpop.f32.mrf.mxu0 }
 0x11a   :  { %v246_v28 = vadd.f32 %v245_v24, %v183_v20 }
 0x11b   :  { %v584_v25 = vpop.f32.mrf.mxu0 }
 0x11d   :  { %v248_v26 = vpop.f32.mrf.mxu0 }
 0x11e   :  { %v249_v33 = vadd.f32 %v248_v26, %v186_v22 }
 0x11f   :  { %v585_v27 = vpop.f32.mrf.mxu0 }
 0x129   :  { %v329_v29 = vpop.f32.mrf.mxu0 }
 0x12a   :  { %v336_v31 = vadd.f32 %v329_v29, %v246_v28 }
 0x12b   :  { %v596_v32 = vpop.f32.mrf.mxu0 }
 0x12c   :  { %v345_v34 = vadd.f32 %v541_v30, %v336_v31 }
 0x12d   :  { %v332_v35 = vpop.f32.mrf.mxu0 }
 0x12e   :  { %v337_v36 = vadd.f32 %v332_v35, %v249_v33  ;;  %v349_v38 = vmul.f32 0.01, %v345_v34  ;;  %vm347_vm4 = vcmp.gt.f32.partialorder %v345_v34, 0.0 }
 0x12f   :  { %v597_v37 = vpop.f32.mrf.mxu0 }
 0x130   :  { %v346_v39 = vadd.f32 %v541_v30, %v337_v36  ;;  %v351_v41 = vsel %vm347_vm4, %v345_v34, %v349_v38 }
 0x132   :  { %vm348_vm5 = vcmp.gt.f32.partialorder %v346_v39, 0.0  ;;  %v350_v40 = vmul.f32 0.01, %v346_v39 }
 0x134   :  { %v352_v42 = vsel %vm348_vm5, %v346_v39, %v350_v40 }
 0x135   :  { %v353_v43 = vpack.c.bf16 %v352_v42, %v351_v41 }
 0x137   :  { %615 = vmatmul.mubr.bf16.vlgmr.msra.gmra.mxu1 %v353_v43 }
 0x1f7   :  { %v459_v45 = vpop.f32.mrf.mxu1 }
 0x1f8   :  { %v460_v46 = vadd.f32 %v542_v44, %v459_v45 }
 0x1f9   :  { %v616_v47 = vpop.f32.mrf.mxu1 }
 0x1fa   :  { %v466_v49 = vmax.f32 %v460_v46, 0.0 }
 0x1fb   :  { %v462_v50 = vpop.f32.mrf.mxu1 }
 0x1fc   :  { %v463_v51 = vadd.f32 %v542_v44, %v462_v50  ;;  %v475_v52 = vmul.f32 %v551_v48, %v466_v49 }
 0x1fd   :  { %v617_v53 = vpop.f32.mrf.mxu1 }
 0x1fe   :  { %v467_v54 = vmax.f32 %v463_v51, 0.0  ;;  %477 = vadd.xlane.f32.xlu0 %v475_v52 }
 0x200   :  { %v476_v55 = vmul.f32 %v551_v48, %v467_v54 }
 0x202   :  { %479 = vadd.xlane.f32.xlu0 %v476_v55 }
 0x287   :  { %v478_v58 = vpop.xlane.xlu0 %477 }
 0x288   :  { %v488_v59 = vadd.f32 %v552_v57, %v478_v58 }
 0x28a   :  { %vm490_vm6 = vcmp.gt.f32.partialorder %v488_v59, 0.0  ;;  %v492_v60 = vmul.f32 0.01, %v488_v59 }
 0x28b   :  { %v480_v61 = vpop.xlane.xlu0 %479 }
 0x28c   :  { %v489_v62 = vadd.f32 %v552_v57, %v480_v61  ;;  %v494_v63 = vsel %vm490_vm6, %v488_v59, %v492_v60 }
 0x28d   :  { %498 = vperm.xlu1 %632, %v494_v63  }
 0x28e   :  { %v493_v0 = vmul.f32 0.01, %v489_v62  ;;  %vm491_vm7 = vcmp.gt.f32.partialorder %v489_v62, 0.0 }
 0x290   :  { %v495_v1 = vsel %vm491_vm7, %v489_v62, %v493_v0 }
 0x291   :  { %503 = vperm.xlu1 %632, %v495_v1  }
 0x308   :  { %v499_v2 = vpop.permute.xlu1 %498 }
 0x309   :  { %506 = vst [vmem:[#allocation14] sm:$0xff] %v499_v2 }
 0x30c   :  { %v504_v3 = vpop.permute.xlu1 %503 }
 0x30d   :  { %507 = vst [vmem:[#allocation14 + $0x8] sm:$0xff] %v504_v3 }
 0x30e   :  { %783 = shalt.err (!%p780_p6)
}
 0x30f   :  { %s814_s12 = smov 128   ;;  %s815_s13 = smov 8  }
 0x310   :  { %519 = dma.vmem_to_hbm [thread:$0]  %s514_s9, 256, %s945_s11, [#allocation5], %s814_s12, %s814_s12, %s815_s13  }
 0x311   :  { %800 = dma.done.wait [#allocation5], 256  }
 0x312   :  { %801 = vsyncadd [#allocation5], 4294967040 }
 0x313   :  { %523 = vsyncpa [#allocation4], 1 }
 0x314   :  { %524 = vsyncpa [#allocation7], 1 }
 0x315   :  { %525 = vsyncpa [#allocation10], 1 }
 0x316   :  { %526 = vsyncpa [#allocation13], 1 }
 0x317   :  { %527 = vsyncpa [#allocation5], 1 }

</bundles_post_ra>
